<compile_context>
chip_gen: v6e
topology: v6e:2x2x1
jax: 0.10.0
libtpu: 0.0.40
codegen_flags: <defaults>
</compile_context>

<pallas_src>
import jax
import jax.numpy as jnp
from jax.experimental import pallas as pl
from jax.experimental.pallas import tpu as pltpu


def _logreg_kernel(x_ref, wt_ref, b_ref, o_ref):
    # MXU matmul with f32 accumulation + broadcast bias add on the VPU.
    # (If x and W^T dtypes differ, jnp promotes inside the kernel - no extra
    # HBM pass in the wrapper.)
    acc = jnp.dot(x_ref[...], wt_ref[...], preferred_element_type=jnp.float32)
    o_ref[...] = (acc + b_ref[...]).astype(o_ref.dtype)


def _vmem_capacity_bytes():
    """Physical VMEM per core (generation-aware); conservative fallback."""
    try:
        cap = int(pltpu.get_tpu_info().vmem_capacity_bytes)
        if cap > 0:
            return cap
    except Exception:
        pass
    return 64 * 1024 * 1024  # safe for all generations (v7x per-TC size)


def _resident_spec(block_shape, use_buffered):
    """BlockSpec for a block whose index_map is constant across the grid.

    Single-buffer it (no point double-buffering a block that never changes);
    fall back to a plain spec if pipeline_mode/Buffered is unavailable.
    """
    if use_buffered and hasattr(pl, "Buffered"):
        try:
            return pl.BlockSpec(block_shape, lambda i: (0, 0),
                                pipeline_mode=pl.Buffered(1))
        except TypeError:
            pass
    return pl.BlockSpec(block_shape, lambda i: (0, 0))


def prepare_logreg_params(weight, bias, compute_dtype=None):
    """One-time parameter prep (hoisted out of the hot path).

    weight: (out_dim, hid), bias: (out_dim,).
    compute_dtype: dtype for W^T (e.g. jnp.bfloat16 when the producer emits
    bf16 activations).  Bias stays f32 (f32 bias add in-kernel).
    Returns (wt, b2d, out_dim) with wt: (hid, out_p), b2d: (1, out_p).
    """
    out_dim, hid = weight.shape
    w_dtype = jnp.float32 if compute_dtype is None else compute_dtype
    wt = weight.T.astype(w_dtype)                 # transpose + cast ONCE
    b2d = bias.reshape(1, out_dim).astype(jnp.float32)

    # Lane-dense output padding: when hid is not >> out_dim, the masked
    # sub-128-lane stores (single vst slot) become the binding path, so pad
    # out to a multiple of 128.  When hid >> out_dim the x DMA dominates and
    # the extra write bytes aren't worth it.
    pad = (out_dim % 128 != 0) and (hid < 16 * out_dim)
    if pad:
        out_p = ((out_dim + 127) // 128) * 128
        wt = jnp.pad(wt, ((0, 0), (0, out_p - out_dim)))
        b2d = jnp.pad(b2d, ((0, 0), (0, out_p - out_dim)))
    return wt, b2d, out_dim


def logreg_apply(x, params, *, out_dtype=jnp.float32):
    """x: (N, hid) -> (N, out_dim) in out_dtype (f32 by default)."""
    wt, b2d, out_dim = params
    n, hid = x.shape
    assert wt.shape[0] == hid, "hid mismatch between x and prepared params"
    out_p = wt.shape[1]

    in_bytes = jnp.dtype(x.dtype).itemsize
    wt_bytes = jnp.dtype(wt.dtype).itemsize
    out_bytes = jnp.dtype(out_dtype).itemsize

    use_buffered = hasattr(pl, "Buffered")
    n_res_buf = 1 if use_buffered else 2
    resident_bytes = n_res_buf * (hid * out_p * wt_bytes + out_p * 4)

    # --- Row tile sized by bytes (mem-bound kernel): target ~4 MiB of
    # streamed x per block, shrink until double-buffered x+out tiles plus the
    # resident W^T/bias fit the generation-aware budget.
    cap = _vmem_capacity_bytes()
    tile_budget = max(2 << 20, int(cap * 0.55) - resident_bytes)
    target_x_tile = 4 << 20
    tm = max(16, ((target_x_tile // (hid * in_bytes)) // 16) * 16)
    row_bytes = hid * in_bytes + out_p * out_bytes
    while tm > 16 and 2 * tm * row_bytes > tile_budget:
        tm = max(16, ((tm // 2) // 16) * 16)

    # For large N make sure there are >=2 grid steps so the "parallel" row
    # axis shards across both v7x TensorCores.
    if n > 256:
        tm = min(tm, ((pl.cdiv(n, 2) + 15) // 16) * 16)
    if n <= tm:
        tm = n  # single full-extent block (legal regardless of (8,128) rule)

    grid = (pl.cdiv(n, tm),)

    # Scoped VMEM limit derived from the actual tiles (+headroom); never below
    # the default, never above physical VMEM.
    streamed_bytes = 2 * tm * row_bytes
    vmem_limit = int((streamed_bytes + resident_bytes) * 1.25) + (2 << 20)
    vmem_limit = max(16 << 20, min(vmem_limit, int(cap * 0.95)))

    cost = pl.CostEstimate(
        flops=2 * n * hid * out_dim,
        transcendentals=0,
        bytes_accessed=(n * hid * in_bytes + hid * out_p * wt_bytes
                        + n * out_p * out_bytes + out_p * 4),
    )

    def build(buffered_residents):
        return pl.pallas_call(
            _logreg_kernel,
            out_shape=jax.ShapeDtypeStruct((n, out_p), out_dtype),
            grid=grid,
            in_specs=[
                pl.BlockSpec((tm, hid), lambda i: (i, 0)),          # streamed x rows
                _resident_spec((hid, out_p), buffered_residents),   # W^T resident
                _resident_spec((1, out_p), buffered_residents),     # bias resident
            ],
            out_specs=pl.BlockSpec((tm, out_p), lambda i: (i, 0)),
            compiler_params=pltpu.CompilerParams(
                dimension_semantics=("parallel",),      # megacore sharding on v7x
                vmem_limit_bytes=vmem_limit),
            cost_estimate=cost,
        )

    try:
        out = build(use_buffered)(x, wt, b2d)
    except Exception:
        # Fallback if single-buffered pipeline_mode is not supported.
        out = build(False)(x, wt, b2d)

    if out_p != out_dim:
        # TODO(synk): defer this slice to the consumer to avoid an extra XLA
        # copy over the padded output when the consumer tolerates padding.
        out = out[:, :out_dim]
    return out


def logreg_forward(x, weight, bias, **kw):
    """Convenience wrapper (does param prep per call; prefer prepare+apply)."""
    return logreg_apply(x, prepare_logreg_params(weight, bias), **kw)


if __name__ == "__main__":
    # Small shapes consistent with LogReg(hid_dim, out_dim).
    N, HID, OUT = 8, 32, 16

    key = jax.random.PRNGKey(0)
    kx, kw, kb = jax.random.split(key, 3)

    # Deterministic init mimicking nn.Linear default (uniform +-1/sqrt(hid)).
    bound = 1.0 / (HID ** 0.5)
    weight = jax.random.uniform(kw, (OUT, HID), jnp.float32, -bound, bound)
    bias = jax.random.uniform(kb, (OUT,), jnp.float32, -bound, bound)
    x = jax.random.normal(kx, (N, HID), jnp.float32)

    ref = x @ weight.T + bias

    # f32 path: params prepared ONCE (transpose/pad hoisted out of the call).
    params = prepare_logreg_params(weight, bias)
    out = jax.block_until_ready(logreg_apply(x, params))
    assert out.shape == (N, OUT)
    assert jnp.allclose(out, ref, atol=1e-5, rtol=1e-5)

    # bf16 compute path: weights pre-cast once in prepare; x arrives in bf16
    # from the (simulated) upstream producer -- no wrapper cast in the hot path.
    params_bf16 = prepare_logreg_params(weight, bias, compute_dtype=jnp.bfloat16)
    x_bf16 = x.astype(jnp.bfloat16)  # stands in for an upstream bf16 producer
    out_bf16 = jax.block_until_ready(logreg_apply(x_bf16, params_bf16))
    assert out_bf16.shape == (N, OUT)
    assert jnp.allclose(out_bf16, ref, atol=5e-2, rtol=5e-2)

    print("KERNEL_OK")
</pallas_src>

<mosaic_0001>
module attributes {stable_mosaic.version = 11 : i64} {
  func.func @_logreg_kernel(%arg0: i32, %arg1: memref<8x32xf32, #tpu.memory_space<vmem>>, %arg2: memref<32x128xf32, #tpu.memory_space<vmem>>, %arg3: memref<1x128xf32, #tpu.memory_space<vmem>>, %arg4: memref<8x128xf32, #tpu.memory_space<vmem>>) attributes {dimension_semantics = [#tpu.dimension_semantics<parallel>], iteration_bounds = array<i64: 1>, scalar_prefetch = 0 : i64, scratch_operands = 0 : i64, tpu.core_type = #tpu.core_type<tc>, window_params = [{transform_indices = @transform_0, window_bounds = array<i64: 8, 32>}, {pipeline_mode = #tpu.pipeline_mode<synchronous>, transform_indices = @transform_1, window_bounds = array<i64: 32, 128>}, {pipeline_mode = #tpu.pipeline_mode<synchronous>, transform_indices = @transform_2, window_bounds = array<i64: 1, 128>}, {transform_indices = @transform_3, window_bounds = array<i64: 8, 128>}]} {
    %c0 = arith.constant 0 : index
    %c0_0 = arith.constant 0 : index
    %0 = vector.load %arg1[%c0, %c0_0] : memref<8x32xf32, #tpu.memory_space<vmem>>, vector<8x32xf32>
    %c0_1 = arith.constant 0 : index
    %c0_2 = arith.constant 0 : index
    %1 = vector.load %arg2[%c0_1, %c0_2] : memref<32x128xf32, #tpu.memory_space<vmem>>, vector<32x128xf32>
    %cst = arith.constant dense<0.000000e+00> : vector<8x128xf32>
    %2 = tpu.matmul %0, %1, %cst {dimension_numbers = #tpu.dot_dimension_numbers<[1], [0], [0], [1], [0, 0, 1, 1], [], []>} : vector<8x32xf32>, vector<32x128xf32>, vector<8x128xf32> -> vector<8x128xf32>
    %c0_3 = arith.constant 0 : index
    %c0_4 = arith.constant 0 : index
    %3 = vector.load %arg3[%c0_3, %c0_4] : memref<1x128xf32, #tpu.memory_space<vmem>>, vector<1x128xf32>
    %4 = vector.broadcast %3 : vector<1x128xf32> to vector<8x128xf32>
    %5 = arith.addf %2, %4 : vector<8x128xf32>
    %c0_5 = arith.constant 0 : index
    %c0_6 = arith.constant 0 : index
    %6 = vector.load %arg4[%c0_5, %c0_6] : memref<8x128xf32, #tpu.memory_space<vmem>>, vector<8x128xf32>
    tpu.vector_store %arg4[%c0_5, %c0_6], %5 {strides = array<i32>} : memref<8x128xf32, #tpu.memory_space<vmem>>, vector<8x128xf32>,
    return
  }
  func.func @transform_0(%arg0: i32) -> (i32, i32) {
    %c0_i32 = arith.constant 0 : i32
    %c0_i32_0 = arith.constant 0 : i32
    return %arg0, %c0_i32 : i32, i32
  }
  func.func @transform_1(%arg0: i32) -> (i32, i32) {
    %c0_i32 = arith.constant 0 : i32
    %c0_i32_0 = arith.constant 0 : i32
    %c0_i32_1 = arith.constant 0 : i32
    return %c0_i32, %c0_i32_0 : i32, i32
  }
  func.func @transform_2(%arg0: i32) -> (i32, i32) {
    %c0_i32 = arith.constant 0 : i32
    %c0_i32_0 = arith.constant 0 : i32
    %c0_i32_1 = arith.constant 0 : i32
    return %c0_i32, %c0_i32_0 : i32, i32
  }
  func.func @transform_3(%arg0: i32) -> (i32, i32) {
    %c0_i32 = arith.constant 0 : i32
    %c0_i32_0 = arith.constant 0 : i32
    return %arg0, %c0_i32 : i32, i32
  }
}

module attributes {stable_mosaic.version = 11 : i64} {
  func.func @_logreg_kernel(%arg0: i32, %arg1: memref<8x32xf32, #tpu.memory_space<vmem>>, %arg2: memref<32x128xf32, #tpu.memory_space<vmem>>, %arg3: memref<1x128xf32, #tpu.memory_space<vmem>>, %arg4: memref<8x128xf32, #tpu.memory_space<vmem>>) attributes {dimension_semantics = [#tpu.dimension_semantics<parallel>], iteration_bounds = array<i64: 1>, scalar_prefetch = 0 : i64, scratch_operands = 0 : i64, tpu.core_type = #tpu.core_type<tc>, window_params = [{transform_indices = @transform_0, window_bounds = array<i64: 8, 32>}, {pipeline_mode = #tpu.pipeline_mode<synchronous>, transform_indices = @transform_1, window_bounds = array<i64: 32, 128>}, {pipeline_mode = #tpu.pipeline_mode<synchronous>, transform_indices = @transform_2, window_bounds = array<i64: 1, 128>}, {transform_indices = @transform_3, window_bounds = array<i64: 8, 128>}]} {
    %c0 = arith.constant 0 : index
    %c0_0 = arith.constant 0 : index
    %0 = vector.load %arg1[%c0, %c0_0] : memref<8x32xf32, #tpu.memory_space<vmem>>, vector<8x32xf32>
    %c0_1 = arith.constant 0 : index
    %c0_2 = arith.constant 0 : index
    %1 = vector.load %arg2[%c0_1, %c0_2] : memref<32x128xf32, #tpu.memory_space<vmem>>, vector<32x128xf32>
    %cst = arith.constant dense<0.000000e+00> : vector<8x128xf32>
    %2 = tpu.matmul %0, %1, %cst {dimension_numbers = #tpu.dot_dimension_numbers<[1], [0], [0], [1], [0, 0, 1, 1], [], []>} : vector<8x32xf32>, vector<32x128xf32>, vector<8x128xf32> -> vector<8x128xf32>
    %c0_3 = arith.constant 0 : index
    %c0_4 = arith.constant 0 : index
    %3 = vector.load %arg3[%c0_3, %c0_4] : memref<1x128xf32, #tpu.memory_space<vmem>>, vector<1x128xf32>
    %4 = vector.broadcast %3 : vector<1x128xf32> to vector<8x128xf32>
    %5 = arith.addf %2, %4 : vector<8x128xf32>
    %c0_5 = arith.constant 0 : index
    %c0_6 = arith.constant 0 : index
    %6 = vector.load %arg4[%c0_5, %c0_6] : memref<8x128xf32, #tpu.memory_space<vmem>>, vector<8x128xf32>
    tpu.vector_store %arg4[%c0_5, %c0_6], %5 {strides = array<i32>} : memref<8x128xf32, #tpu.memory_space<vmem>>, vector<8x128xf32>,
    return
  }
  func.func @transform_0(%arg0: i32) -> (i32, i32) {
    %c0_i32 = arith.constant 0 : i32
    %c0_i32_0 = arith.constant 0 : i32
    return %arg0, %c0_i32 : i32, i32
  }
  func.func @transform_1(%arg0: i32) -> (i32, i32) {
    %c0_i32 = arith.constant 0 : i32
    %c0_i32_0 = arith.constant 0 : i32
    %c0_i32_1 = arith.constant 0 : i32
    return %c0_i32, %c0_i32_0 : i32, i32
  }
  func.func @transform_2(%arg0: i32) -> (i32, i32) {
    %c0_i32 = arith.constant 0 : i32
    %c0_i32_0 = arith.constant 0 : i32
    %c0_i32_1 = arith.constant 0 : i32
    return %c0_i32, %c0_i32_0 : i32, i32
  }
  func.func @transform_3(%arg0: i32) -> (i32, i32) {
    %c0_i32 = arith.constant 0 : i32
    %c0_i32_0 = arith.constant 0 : i32
    return %arg0, %c0_i32 : i32, i32
  }
}

</mosaic_0001>

<bundles_post_ra>
// kernel: tpu_custom_call.1
= control target key start
LH: loop header
LB: loop body
LE: loop exit
PB: predicated region body
PF: predicated region fallthrough
CT: control target
= control target key end

     0   :  { %8 = vsyncpa [#allocation3], 0  ;;  %s274_s0 = inlined_call_operand.hbm [shape: f32[8,32], index: 0, kind: input, shape index: {}]   ;;  %s275_s1 = inlined_call_operand.hbm [shape: f32[32,128], index: 1, kind: input, shape index: {}]   ;;  %s276_s2 = inlined_call_operand.vmem [shape: f32[1,128], index: 2, kind: input, shape index: {}]   ;;  %s277_s3 = inlined_call_operand.hbm [shape: f32[8,128], index: 3, kind: output, shape index: {}]  }
   0x1   :  { %9 = vsyncpa [#allocation6], 0 }
   0x2   :  { %10 = vsyncpa [#allocation4], 0  ;;  %s235_s12 = smov [#allocation2]   ;;  %s236_s14 = smov [#allocation5]  }
   0x3   :  { %s17_s13 = sshll.u32 %s235_s12, 4  ;;  %s26_s15 = sshll.u32 %s236_s14, 4  ;;  %s18_s13 = int_to_ptr.vmem [resolvable:$true] %s17_s13  ;;  %s27_s15 = int_to_ptr.vmem [resolvable:$true] %s26_s15 }
   0x4   :  { %s177_s16 = scalar_lea.vmem %s18_s13, 128  ;;  %p182_p1 = scmp.lt.s32.totalorder %s18_s13, %s18_s13 }
   0x5   :  { %p178_p0 = scmp.ne.s32.totalorder %s18_s13, %s177_s16  ;;  %p183_p2 = scmp.lt.s32.totalorder %s177_s16, %s177_s16 }
   0x7   :  { %p184_p3 = por %p183_p2, %p182_p1 }
   0x9   :  { %p185_p4 = pnand %p184_p3, %p178_p0 }
   0xb   :  { %188 = shalt.err (!%p185_p4)
}
   0xc   :  { %20 = dma.hbm_to_vmem [thread:$0]  %s274_s0, 128, %s18_s13, [#allocation3]  }
   0xd   :  { %s197_s19 = scalar_lea.vmem %s27_s15, 512  ;;  %p202_p6 = scmp.lt.s32.totalorder %s27_s15, %s27_s15 }
   0xe   :  { %p198_p5 = scmp.ne.s32.totalorder %s27_s15, %s197_s19  ;;  %p203_p7 = scmp.lt.s32.totalorder %s197_s19, %s197_s19 }
  0x10   :  { %p204_p8 = por %p203_p7, %p202_p6 }
  0x12   :  { %p205_p9 = pnand %p204_p8, %p198_p5 }
  0x14   :  { %208 = shalt.err (!%p205_p9)
}
  0x15   :  { %s237_s20 = smov 128   ;;  %s238_s21 = smov 8  }
  0x16   :  { %32 = dma.hbm_to_vmem [thread:$0]  %s275_s1, 512, %s27_s15, [#allocation6], %s237_s20, %s237_s20, %s238_s21  }
  0x17   :  { %229 = dma.done.wait [#allocation3], 128  }
  0x18   :  { %230 = vsyncadd [#allocation3], 4294967168 }
  0x19   :  { %231 = dma.done.wait [#allocation6], 512  }
  0x1a   :  { %232 = vsyncadd [#allocation6], 4294966784  ;;  %v239_v0 = vmov 0.0   ;;  %vm240_vm0 = vmmov 0   ;;  %v45_v1 = vld [vmem:[#allocation5 + $0x18] sm:$0xff]  ;;  %v44_v2 = vld [vmem:[#allocation5 + $0x10] sm:$0xff] }
  0x1b   :  { %151 = vmatprep.subr.mxu0 %v239_v0  ;;  %159 = vmatprep.mubr.msk.f32.mxu0 %vm240_vm0, %v239_v0  ;;  %v43_v3 = vld [vmem:[#allocation5 + $0x8] sm:$0xff]  ;;  %v42_v4 = vld [vmem:[#allocation5] sm:$0xff]  ;;  %v41_v5 = vld [vmem:[#allocation2] sm:$0xff]  ;;  %vm53_vm1 = vcmask 261120   ;;  %s241_s24 = smov [#allocation7]  }
  0x1c   :  { %152 = vmatpush3.msra.mxu0 %v45_v1  ;;  %v144_v6 = vld [vmem:[%s276_s2] ss:$0 sm:$0xff]  ;;  %s134_s25 = sshll.u32 %s241_s24, 4  ;;  %s135_s25 = int_to_ptr.vmem [resolvable:$true] %s134_s25 }
  0x1d   :  { %153 = vmatprep.subr.mxu0 %v239_v0  ;;  %s209_s26 = scalar_lea.vmem %s135_s25, 128  ;;  %p214_p11 = scmp.lt.s32.totalorder %s135_s25, %s135_s25 }
  0x1e   :  { %154 = vmatpush3.msra.mxu0 %v44_v2  ;;  %p210_p10 = scmp.ne.s32.totalorder %s135_s25, %s209_s26  ;;  %p215_p12 = scmp.lt.s32.totalorder %s209_s26, %s209_s26 }
  0x1f   :  { %155 = vmatprep.subr.mxu0 %v239_v0 }
  0x20   :  { %156 = vmatpush3.msra.mxu0 %v43_v3  ;;  %p216_p13 = por %p215_p12, %p214_p11 }
  0x21   :  { %157 = vmatprep.subr.mxu0 %v239_v0 }
  0x22   :  { %158 = vmatpush3.msra.mxu0 %v42_v4  ;;  %p217_p0 = pnand %p216_p13, %p210_p10 }
  0x23   :  { %160 = vmatmul.mubr.msk.f32.vlgmr.msra.gmra.mxu0 %vm53_vm1, %v41_v5 }
  0xe3   :  { %v123_v7 = vpop.f32.mrf.mxu0 }
  0xe4   :  { %v124_v8 = vadd.f32 %v144_v6, %v123_v7 }
  0xe5   :  { %v161_v9 = vpop.f32.mrf.mxu0 }
  0xe6   :  { %127 = vst [vmem:[#allocation7] sm:$0xff] %v124_v8 }
  0xe7   :  { %220 = shalt.err (!%p217_p0)
}
  0xe8   :  { %137 = dma.vmem_to_hbm [thread:$0]  %s135_s25, 128, %s277_s3, [#allocation4]  }
  0xe9   :  { %233 = dma.done.wait [#allocation4], 128  }
  0xea   :  { %234 = vsyncadd [#allocation4], 4294967168 }
  0xeb   :  { %141 = vsyncpa [#allocation3], 1 }
  0xec   :  { %142 = vsyncpa [#allocation6], 1 }
  0xed   :  { %143 = vsyncpa [#allocation4], 1 }

// kernel: tpu_custom_call.1
= control target key start
LH: loop header
LB: loop body
LE: loop exit
PB: predicated region body
PF: predicated region fallthrough
CT: control target
= control target key end

     0   :  { %8 = vsyncpa [#allocation3], 0  ;;  %s274_s0 = inlined_call_operand.hbm [shape: f32[8,32], index: 0, kind: input, shape index: {}]   ;;  %s275_s1 = inlined_call_operand.hbm [shape: f32[32,128], index: 1, kind: input, shape index: {}]   ;;  %s276_s2 = inlined_call_operand.vmem [shape: f32[1,128], index: 2, kind: input, shape index: {}]   ;;  %s277_s3 = inlined_call_operand.hbm [shape: f32[8,128], index: 3, kind: output, shape index: {}]  }
   0x1   :  { %9 = vsyncpa [#allocation6], 0 }
   0x2   :  { %10 = vsyncpa [#allocation4], 0  ;;  %s235_s12 = smov [#allocation2]   ;;  %s236_s14 = smov [#allocation5]  }
   0x3   :  { %s17_s13 = sshll.u32 %s235_s12, 4  ;;  %s26_s15 = sshll.u32 %s236_s14, 4  ;;  %s18_s13 = int_to_ptr.vmem [resolvable:$true] %s17_s13  ;;  %s27_s15 = int_to_ptr.vmem [resolvable:$true] %s26_s15 }
   0x4   :  { %s177_s16 = scalar_lea.vmem %s18_s13, 128  ;;  %p182_p1 = scmp.lt.s32.totalorder %s18_s13, %s18_s13 }
   0x5   :  { %p178_p0 = scmp.ne.s32.totalorder %s18_s13, %s177_s16  ;;  %p183_p2 = scmp.lt.s32.totalorder %s177_s16, %s177_s16 }
   0x7   :  { %p184_p3 = por %p183_p2, %p182_p1 }
   0x9   :  { %p185_p4 = pnand %p184_p3, %p178_p0 }
   0xb   :  { %188 = shalt.err (!%p185_p4)
}
   0xc   :  { %20 = dma.hbm_to_vmem [thread:$0]  %s274_s0, 128, %s18_s13, [#allocation3]  }
   0xd   :  { %s197_s19 = scalar_lea.vmem %s27_s15, 512  ;;  %p202_p6 = scmp.lt.s32.totalorder %s27_s15, %s27_s15 }
   0xe   :  { %p198_p5 = scmp.ne.s32.totalorder %s27_s15, %s197_s19  ;;  %p203_p7 = scmp.lt.s32.totalorder %s197_s19, %s197_s19 }
  0x10   :  { %p204_p8 = por %p203_p7, %p202_p6 }
  0x12   :  { %p205_p9 = pnand %p204_p8, %p198_p5 }
  0x14   :  { %208 = shalt.err (!%p205_p9)
}
  0x15   :  { %s237_s20 = smov 128   ;;  %s238_s21 = smov 8  }
  0x16   :  { %32 = dma.hbm_to_vmem [thread:$0]  %s275_s1, 512, %s27_s15, [#allocation6], %s237_s20, %s237_s20, %s238_s21  }
  0x17   :  { %229 = dma.done.wait [#allocation3], 128  }
  0x18   :  { %230 = vsyncadd [#allocation3], 4294967168 }
  0x19   :  { %231 = dma.done.wait [#allocation6], 512  }
  0x1a   :  { %232 = vsyncadd [#allocation6], 4294966784  ;;  %v239_v0 = vmov 0.0   ;;  %vm240_vm0 = vmmov 0   ;;  %v45_v1 = vld [vmem:[#allocation5 + $0x18] sm:$0xff]  ;;  %v44_v2 = vld [vmem:[#allocation5 + $0x10] sm:$0xff] }
  0x1b   :  { %151 = vmatprep.subr.mxu0 %v239_v0  ;;  %159 = vmatprep.mubr.msk.f32.mxu0 %vm240_vm0, %v239_v0  ;;  %v43_v3 = vld [vmem:[#allocation5 + $0x8] sm:$0xff]  ;;  %v42_v4 = vld [vmem:[#allocation5] sm:$0xff]  ;;  %v41_v5 = vld [vmem:[#allocation2] sm:$0xff]  ;;  %vm53_vm1 = vcmask 261120   ;;  %s241_s24 = smov [#allocation7]  }
  0x1c   :  { %152 = vmatpush3.msra.mxu0 %v45_v1  ;;  %v144_v6 = vld [vmem:[%s276_s2] ss:$0 sm:$0xff]  ;;  %s134_s25 = sshll.u32 %s241_s24, 4  ;;  %s135_s25 = int_to_ptr.vmem [resolvable:$true] %s134_s25 }
  0x1d   :  { %153 = vmatprep.subr.mxu0 %v239_v0  ;;  %s209_s26 = scalar_lea.vmem %s135_s25, 128  ;;  %p214_p11 = scmp.lt.s32.totalorder %s135_s25, %s135_s25 }
  0x1e   :  { %154 = vmatpush3.msra.mxu0 %v44_v2  ;;  %p210_p10 = scmp.ne.s32.totalorder %s135_s25, %s209_s26  ;;  %p215_p12 = scmp.lt.s32.totalorder %s209_s26, %s209_s26 }
  0x1f   :  { %155 = vmatprep.subr.mxu0 %v239_v0 }
  0x20   :  { %156 = vmatpush3.msra.mxu0 %v43_v3  ;;  %p216_p13 = por %p215_p12, %p214_p11 }
  0x21   :  { %157 = vmatprep.subr.mxu0 %v239_v0 }
  0x22   :  { %158 = vmatpush3.msra.mxu0 %v42_v4  ;;  %p217_p0 = pnand %p216_p13, %p210_p10 }
  0x23   :  { %160 = vmatmul.mubr.msk.f32.vlgmr.msra.gmra.mxu0 %vm53_vm1, %v41_v5 }
  0xe3   :  { %v123_v7 = vpop.f32.mrf.mxu0 }
  0xe4   :  { %v124_v8 = vadd.f32 %v144_v6, %v123_v7 }
  0xe5   :  { %v161_v9 = vpop.f32.mrf.mxu0 }
  0xe6   :  { %127 = vst [vmem:[#allocation7] sm:$0xff] %v124_v8 }
  0xe7   :  { %220 = shalt.err (!%p217_p0)
}
  0xe8   :  { %137 = dma.vmem_to_hbm [thread:$0]  %s135_s25, 128, %s277_s3, [#allocation4]  }
  0xe9   :  { %233 = dma.done.wait [#allocation4], 128  }
  0xea   :  { %234 = vsyncadd [#allocation4], 4294967168 }
  0xeb   :  { %141 = vsyncpa [#allocation3], 1 }
  0xec   :  { %142 = vsyncpa [#allocation6], 1 }
  0xed   :  { %143 = vsyncpa [#allocation4], 1 }

</bundles_post_ra>
